<compile_context>
chip_gen: v5e
topology: v5e:2x2
jax: 0.10.0
libtpu: 0.0.40
codegen_flags: <defaults>
</compile_context>

<pallas_src>
import jax
import jax.numpy as jnp
from jax.experimental import pallas as pl
from jax.experimental.pallas import tpu as pltpu

_BN_EPS = 1e-5
_DEF_TK = 512     # contraction-dim tile target
_DEF_TN = 2048    # output-feature tile target (bf16 weight tile = 2 MiB, x2 buffers = 4 MiB)


def _pick_tile(dim: int, target: int) -> int:
    """Largest lane-aligned (multiple of 128) tile <= target that divides dim.

    Falls back to the full dimension (single block) when no aligned divisor exists.
    """
    if dim <= target:
        return dim
    t = (target // 128) * 128
    while t >= 128:
        if dim % t == 0:
            return t
        t -= 128
    return dim


def _linear_bn_relu_kernel(x_ref, w_ref, b_ref, g_ref, beta_ref, out_ref, acc_ref):
    """Grid = (N tiles [parallel], K tiles [arbitrary]). Fused Linear + BN1d(train) + ReLU."""
    k = pl.program_id(1)

    @pl.when(k == 0)
    def _():
        acc_ref[...] = jnp.zeros_like(acc_ref)

    # bf16 MXU matmul, f32 accumulation.
    acc_ref[...] += jnp.dot(
        x_ref[...].astype(jnp.bfloat16),
        w_ref[...],
        preferred_element_type=jnp.float32,
    )

    @pl.when(k == pl.num_programs(1) - 1)
    def _():
        h = acc_ref[...] + b_ref[...]                       # (B, tn) f32
        # BatchNorm1d, training mode: batch mean / biased batch variance (per feature).
        mean = jnp.mean(h, axis=0, keepdims=True)
        var = jnp.mean((h - mean) * (h - mean), axis=0, keepdims=True)
        h = (h - mean) * jax.lax.rsqrt(var + _BN_EPS)
        h = h * g_ref[...] + beta_ref[...]
        out_ref[...] = jnp.maximum(h, 0.0).astype(out_ref.dtype)


def _linear_kernel(x_ref, w_ref, b_ref, out_ref, acc_ref):
    """Grid = (N tiles [parallel], K tiles [arbitrary]). Plain Linear."""
    k = pl.program_id(1)

    @pl.when(k == 0)
    def _():
        acc_ref[...] = jnp.zeros_like(acc_ref)

    acc_ref[...] += jnp.dot(
        x_ref[...].astype(jnp.bfloat16),
        w_ref[...],
        preferred_element_type=jnp.float32,
    )

    @pl.when(k == pl.num_programs(1) - 1)
    def _():
        out_ref[...] = (acc_ref[...] + b_ref[...]).astype(out_ref.dtype)


def _layer_call(kernel, x, w, small_params, *, tk, tn):
    """Runs one layer as a gridded, weight-streaming pallas_call."""
    B, K = x.shape
    Kw, N = w.shape
    assert Kw == K
    tk = _pick_tile(K, tk)
    tn = _pick_tile(N, tn)
    grid = (N // tn, K // tk)                                # reduction axis last

    in_specs = [
        pl.BlockSpec((B, tk), lambda n, k: (0, k)),          # activations (small, f32)
        pl.BlockSpec((tk, tn), lambda n, k: (k, n)),         # bf16 weight tiles streamed from HBM
    ]
    in_specs += [pl.BlockSpec((1, tn), lambda n, k: (0, n)) for _ in small_params]
    out_spec = pl.BlockSpec((B, tn), lambda n, k: (0, n))

    cost = pl.CostEstimate(
        flops=2 * B * K * N,
        transcendentals=0,
        bytes_accessed=int(w.size * w.dtype.itemsize + x.size * x.dtype.itemsize + B * N * 4),
    )

    return pl.pallas_call(
        kernel,
        out_shape=jax.ShapeDtypeStruct((B, N), jnp.float32),
        grid=grid,
        in_specs=in_specs,
        out_specs=out_spec,
        scratch_shapes=[pltpu.VMEM((B, tn), jnp.float32)],   # f32 accumulator
        compiler_params=pltpu.CompilerParams(
            dimension_semantics=("parallel", "arbitrary"),   # N across cores, K sequential
            vmem_limit_bytes=32 * 1024 * 1024,
        ),
        cost_estimate=cost,
    )(x, w, *small_params)


def projector_forward(x, hidden_params, final_params, *, tk=_DEF_TK, tn=_DEF_TN):
    """VICReg Projector forward pass.

    Args:
      x: (B, D) or (B, C, H, W); ndim>2 inputs are flattened as in the PyTorch module.
      hidden_params: list of (W, b, gamma, beta); W: (in_dim, out_dim) bf16,
          b/gamma/beta: (1, out_dim) f32.
      final_params: (W, b) for the last Linear.
    """
    if x.ndim > 2:
        x = x.reshape(x.shape[0], -1)
    h = x.astype(jnp.float32)
    for (w, b, g, beta) in hidden_params:
        h = _layer_call(_linear_bn_relu_kernel, h, w, (b, g, beta), tk=tk, tn=tn)
    w_out, b_out = final_params
    return _layer_call(_linear_kernel, h, w_out, (b_out,), tk=tk, tn=tn)


def init_projector_params(key, input_dim, hidden_dims, output_dim):
    """Deterministic synthetic params (stand-in for nn.Linear / nn.BatchNorm1d). Weights bf16."""
    hidden_params = []
    in_dim = input_dim
    for hdim in hidden_dims:
        key, kw = jax.random.split(key)
        scale = 1.0 / jnp.sqrt(jnp.float32(in_dim))
        w = (jax.random.normal(kw, (in_dim, hdim), dtype=jnp.float32) * scale).astype(jnp.bfloat16)
        b = jnp.zeros((1, hdim), dtype=jnp.float32)
        gamma = jnp.ones((1, hdim), dtype=jnp.float32)
        beta = jnp.zeros((1, hdim), dtype=jnp.float32)
        hidden_params.append((w, b, gamma, beta))
        in_dim = hdim
    key, kw = jax.random.split(key)
    scale = 1.0 / jnp.sqrt(jnp.float32(in_dim))
    w_out = (jax.random.normal(kw, (in_dim, output_dim), dtype=jnp.float32) * scale).astype(jnp.bfloat16)
    b_out = jnp.zeros((1, output_dim), dtype=jnp.float32)
    return hidden_params, (w_out, b_out)


if __name__ == "__main__":
    key = jax.random.PRNGKey(0)
    key, kx = jax.random.split(key)

    # Small shapes consistent with the module: NCHW input flattened to (B, C*H*W).
    B, C, H, W = 8, 4, 8, 8
    x = jax.random.normal(kx, (B, C, H, W), dtype=jnp.float32)

    input_dim = C * H * W          # 256
    hidden_dims = [256, 256]       # small stand-in for the default [2048, 2048, 2048]
    output_dim = 256               # matches the module default output_dim

    hidden_params, final_params = init_projector_params(
        key, input_dim, hidden_dims, output_dim
    )

    # Small tiles here so the (N, K) grid / K-accumulator / BN-finalize path is exercised
    # even at toy dims; real dims use the defaults (tk=512, tn=2048).
    out = projector_forward(x, hidden_params, final_params, tk=128, tn=128)
    jax.block_until_ready(out)

    # Pure-JAX reference mirroring the kernel's numerics (bf16 matmul operands, f32 accum).
    href = x.reshape(B, -1).astype(jnp.float32)
    for (w, b, g, beta) in hidden_params:
        hh = jnp.dot(href.astype(jnp.bfloat16), w, preferred_element_type=jnp.float32) + b
        m = jnp.mean(hh, axis=0, keepdims=True)
        v = jnp.mean((hh - m) ** 2, axis=0, keepdims=True)
        href = jnp.maximum((hh - m) * jax.lax.rsqrt(v + _BN_EPS) * g + beta, 0.0)
    ref = (
        jnp.dot(href.astype(jnp.bfloat16), final_params[0], preferred_element_type=jnp.float32)
        + final_params[1]
    )

    assert out.shape == (B, output_dim)
    assert jnp.allclose(out, ref, atol=1e-2, rtol=1e-2), float(jnp.max(jnp.abs(out - ref)))

    print("KERNEL_OK")
</pallas_src>

<mosaic_0001>
module attributes {stable_mosaic.version = 11 : i64} {
  func.func @_linear_bn_relu_kernel(%arg0: i32, %arg1: i32, %arg2: memref<8x128xf32, #tpu.memory_space<vmem>>, %arg3: memref<128x128xbf16, #tpu.memory_space<vmem>>, %arg4: memref<1x128xf32, #tpu.memory_space<vmem>>, %arg5: memref<1x128xf32, #tpu.memory_space<vmem>>, %arg6: memref<1x128xf32, #tpu.memory_space<vmem>>, %arg7: memref<8x128xf32, #tpu.memory_space<vmem>>, %arg8: memref<8x128xf32, #tpu.memory_space<vmem>>) attributes {dimension_semantics = [#tpu.dimension_semantics<parallel>, #tpu.dimension_semantics<arbitrary>], iteration_bounds = array<i64: 2, 2>, scalar_prefetch = 0 : i64, scratch_operands = 1 : i64, tpu.core_type = #tpu.core_type<tc>, window_params = [{transform_indices = @transform_0, window_bounds = array<i64: 8, 128>}, {transform_indices = @transform_1, window_bounds = array<i64: 128, 128>}, {transform_indices = @transform_2, window_bounds = array<i64: 1, 128>}, {transform_indices = @transform_3, window_bounds = array<i64: 1, 128>}, {transform_indices = @transform_4, window_bounds = array<i64: 1, 128>}, {transform_indices = @transform_5, window_bounds = array<i64: 8, 128>}]} {
    %c0_i32 = arith.constant 0 : i32
    %0 = arith.cmpi eq, %arg1, %c0_i32 : i32
    %1 = arith.extui %0 : i1 to i32
    %c0_i32_0 = arith.constant 0 : i32
    %2 = arith.cmpi ne, %1, %c0_i32_0 : i32
    scf.if %2 {
      %cst_9 = arith.constant 0.000000e+00 : f32
      %13 = vector.broadcast %cst_9 : f32 to vector<8x128xf32>
      %c0_10 = arith.constant 0 : index
      %c0_11 = arith.constant 0 : index
      %14 = vector.load %arg8[%c0_10, %c0_11] : memref<8x128xf32, #tpu.memory_space<vmem>>, vector<8x128xf32>
      tpu.vector_store %arg8[%c0_10, %c0_11], %13 {strides = array<i32>} : memref<8x128xf32, #tpu.memory_space<vmem>>, vector<8x128xf32>,
    } else {
    }
    %c0 = arith.constant 0 : index
    %c0_1 = arith.constant 0 : index
    %3 = vector.load %arg8[%c0, %c0_1] : memref<8x128xf32, #tpu.memory_space<vmem>>, vector<8x128xf32>
    %c0_2 = arith.constant 0 : index
    %c0_3 = arith.constant 0 : index
    %4 = vector.load %arg2[%c0_2, %c0_3] : memref<8x128xf32, #tpu.memory_space<vmem>>, vector<8x128xf32>
    %5 = arith.truncf %4 : vector<8x128xf32> to vector<8x128xbf16>
    %c0_4 = arith.constant 0 : index
    %c0_5 = arith.constant 0 : index
    %6 = vector.load %arg3[%c0_4, %c0_5] : memref<128x128xbf16, #tpu.memory_space<vmem>>, vector<128x128xbf16>
    %cst = arith.constant dense<0.000000e+00> : vector<8x128xf32>
    %7 = tpu.matmul %5, %6, %cst {dimension_numbers = #tpu.dot_dimension_numbers<[1], [0], [0], [1], [0, 0, 1, 1], [], []>} : vector<8x128xbf16>, vector<128x128xbf16>, vector<8x128xf32> -> vector<8x128xf32>
    %8 = arith.addf %3, %7 : vector<8x128xf32>
    %c0_6 = arith.constant 0 : index
    %c0_7 = arith.constant 0 : index
    %9 = vector.load %arg8[%c0_6, %c0_7] : memref<8x128xf32, #tpu.memory_space<vmem>>, vector<8x128xf32>
    tpu.vector_store %arg8[%c0_6, %c0_7], %8 {strides = array<i32>} : memref<8x128xf32, #tpu.memory_space<vmem>>, vector<8x128xf32>,
    %c1_i32 = arith.constant 1 : i32
    %10 = arith.cmpi eq, %arg1, %c1_i32 : i32
    %11 = arith.extui %10 : i1 to i32
    %c0_i32_8 = arith.constant 0 : i32
    %12 = arith.cmpi ne, %11, %c0_i32_8 : i32
    scf.if %12 {
      %c0_9 = arith.constant 0 : index
      %c0_10 = arith.constant 0 : index
      %13 = vector.load %arg8[%c0_9, %c0_10] : memref<8x128xf32, #tpu.memory_space<vmem>>, vector<8x128xf32>
      %c0_11 = arith.constant 0 : index
      %c0_12 = arith.constant 0 : index
      %14 = vector.load %arg4[%c0_11, %c0_12] : memref<1x128xf32, #tpu.memory_space<vmem>>, vector<1x128xf32>
      %15 = vector.broadcast %14 : vector<1x128xf32> to vector<8x128xf32>
      %16 = arith.addf %13, %15 : vector<8x128xf32>
      %cst_13 = arith.constant dense<0.000000e+00> : vector<128xf32>
      %17 = vector.multi_reduction <add>, %16, %cst_13 [0] : vector<8x128xf32> to vector<128xf32>
      %18 = vector.shape_cast %17 : vector<128xf32> to vector<1x128xf32>
      %cst_14 = arith.constant 8.000000e+00 : f32
      %19 = vector.broadcast %cst_14 : f32 to vector<1x128xf32>
      %20 = arith.divf %18, %19 : vector<1x128xf32>
      %21 = vector.broadcast %20 : vector<1x128xf32> to vector<8x128xf32>
      %22 = arith.subf %16, %21 : vector<8x128xf32>
      %23 = vector.broadcast %20 : vector<1x128xf32> to vector<8x128xf32>
      %24 = arith.subf %16, %23 : vector<8x128xf32>
      %25 = arith.mulf %22, %24 : vector<8x128xf32>
      %cst_15 = arith.constant dense<0.000000e+00> : vector<128xf32>
      %26 = vector.multi_reduction <add>, %25, %cst_15 [0] : vector<8x128xf32> to vector<128xf32>
      %27 = vector.shape_cast %26 : vector<128xf32> to vector<1x128xf32>
      %cst_16 = arith.constant 8.000000e+00 : f32
      %28 = vector.broadcast %cst_16 : f32 to vector<1x128xf32>
      %29 = arith.divf %27, %28 : vector<1x128xf32>
      %30 = vector.broadcast %20 : vector<1x128xf32> to vector<8x128xf32>
      %31 = arith.subf %16, %30 : vector<8x128xf32>
      %cst_17 = arith.constant 9.99999974E-6 : f32
      %32 = vector.broadcast %cst_17 : f32 to vector<1x128xf32>
      %33 = arith.addf %29, %32 : vector<1x128xf32>
      %34 = math.rsqrt %33 : vector<1x128xf32>
      %35 = vector.broadcast %34 : vector<1x128xf32> to vector<8x128xf32>
      %36 = arith.mulf %31, %35 : vector<8x128xf32>
      %c0_18 = arith.constant 0 : index
      %c0_19 = arith.constant 0 : index
      %37 = vector.load %arg5[%c0_18, %c0_19] : memref<1x128xf32, #tpu.memory_space<vmem>>, vector<1x128xf32>
      %38 = vector.broadcast %37 : vector<1x128xf32> to vector<8x128xf32>
      %39 = arith.mulf %36, %38 : vector<8x128xf32>
      %c0_20 = arith.constant 0 : index
      %c0_21 = arith.constant 0 : index
      %40 = vector.load %arg6[%c0_20, %c0_21] : memref<1x128xf32, #tpu.memory_space<vmem>>, vector<1x128xf32>
      %41 = vector.broadcast %40 : vector<1x128xf32> to vector<8x128xf32>
      %42 = arith.addf %39, %41 : vector<8x128xf32>
      %cst_22 = arith.constant 0.000000e+00 : f32
      %43 = vector.broadcast %cst_22 : f32 to vector<8x128xf32>
      %44 = arith.maximumf %42, %43 : vector<8x128xf32>
      %c0_23 = arith.constant 0 : index
      %c0_24 = arith.constant 0 : index
      %45 = vector.load %arg7[%c0_23, %c0_24] : memref<8x128xf32, #tpu.memory_space<vmem>>, vector<8x128xf32>
      tpu.vector_store %arg7[%c0_23, %c0_24], %44 {strides = array<i32>} : memref<8x128xf32, #tpu.memory_space<vmem>>, vector<8x128xf32>,
    } else {
    }
    return
  }
  func.func @transform_0(%arg0: i32, %arg1: i32) -> (i32, i32) {
    %c0_i32 = arith.constant 0 : i32
    %c0_i32_0 = arith.constant 0 : i32
    return %c0_i32, %arg1 : i32, i32
  }
  func.func @transform_1(%arg0: i32, %arg1: i32) -> (i32, i32) {
    %c0_i32 = arith.constant 0 : i32
    return %arg1, %arg0 : i32, i32
  }
  func.func @transform_2(%arg0: i32, %arg1: i32) -> (i32, i32) {
    %c0_i32 = arith.constant 0 : i32
    %c0_i32_0 = arith.constant 0 : i32
    return %c0_i32, %arg0 : i32, i32
  }
  func.func @transform_3(%arg0: i32, %arg1: i32) -> (i32, i32) {
    %c0_i32 = arith.constant 0 : i32
    %c0_i32_0 = arith.constant 0 : i32
    return %c0_i32, %arg0 : i32, i32
  }
  func.func @transform_4(%arg0: i32, %arg1: i32) -> (i32, i32) {
    %c0_i32 = arith.constant 0 : i32
    %c0_i32_0 = arith.constant 0 : i32
    return %c0_i32, %arg0 : i32, i32
  }
  func.func @transform_5(%arg0: i32, %arg1: i32) -> (i32, i32) {
    %c0_i32 = arith.constant 0 : i32
    %c0_i32_0 = arith.constant 0 : i32
    return %c0_i32, %arg0 : i32, i32
  }
}

</mosaic_0001>

<bundles_post_ra>
// kernel: tpu_custom_call.1
= control target key start
LH: loop header
LB: loop body
LE: loop exit
PB: predicated region body
PF: predicated region fallthrough
CT: control target
= control target key end

     0   :  { %s1553_s0 = inlined_call_operand.hbm [shape: f32[8,256], index: 0, kind: input, shape index: {}]   ;;  %s1554_s1 = inlined_call_operand.hbm [shape: bf16[256,256], index: 1, kind: input, shape index: {}]   ;;  %s1555_s2 = inlined_call_operand.hbm [shape: f32[1,256], index: 2, kind: input, shape index: {}]   ;;  %s1556_s3 = inlined_call_operand.vmem [shape: f32[1,256], index: 3, kind: input, shape index: {}]   ;;  %s1557_s4 = inlined_call_operand.hbm [shape: f32[1,256], index: 4, kind: input, shape index: {}]   ;;  %s1558_s5 = inlined_call_operand.hbm [shape: f32[8,256], index: 5, kind: output, shape index: {}]  }
   0x1   :  { %1565 = sst [smem:[#allocation25_spill]] %s1553_s0 }
   0x2   :  { %1566 = sst [smem:[#allocation26_spill]] %s1554_s1 }
   0x3   :  { %1567 = sst [smem:[#allocation27_spill]] %s1555_s2 }
   0x4   :  { %1568 = sst [smem:[#allocation28_spill]] %s1556_s3 }
   0x5   :  { %1569 = sst [smem:[#allocation29_spill]] %s1558_s5 }
   0x6   :  { %10 = vsyncpa [#allocation4], 0 }
   0x7   :  { %12 = vsyncpa [#allocation4 + $0x1], 0 }
   0x8   :  { %13 = vsyncpa [#allocation7], 0 }
   0x9   :  { %15 = vsyncpa [#allocation7 + $0x1], 0 }
   0xa   :  { %16 = vsyncpa [#allocation10], 0 }
   0xb   :  { %18 = vsyncpa [#allocation10 + $0x1], 0 }
   0xc   :  { %19 = vsyncpa [#allocation5], 0 }
   0xd   :  { %21 = vsyncpa [#allocation5 + $0x1], 0  ;;  %s1221_s18 = smov 0   ;;  %s1223_s19 = smov 0  }
   0xe   :  { %s1225_s20 = smov 0   ;;  %s1227_s21 = smov 0  }
   0xf   :  { %s1229_s22 = smov 0   ;;  %s1231_s23 = smov 0  }
  0x10   :  { %s1233_s24 = smov 0   ;;  %s1235_s25 = smov 0  }
  0x11   :  { %s1237_s26 = smov 0   ;;  %s1239_s27 = smov 0  }
  0x12   :  { %s1241_s28 = smov 0   ;;  %s1243_s29 = smov 0  }
  0x13   :  { %s1245_s30 = smov 0   ;;  %s1247_s6 = smov 0  }
  0x14 LB: > { %1570 = sst [smem:[#allocation17_spill]] %s1152_s23  ;;  %p54_p0 = scmp.eq.s32.totalorder %s1184_s6, 0  ;;  %s1184_s6 = sphi %s1247_s6, %s27_s6   ;;  %s1180_s30 = sphi %s1245_s30, %s1612_s30   ;;  %s1176_s29 = sphi %s1243_s29, %s1611_s29   ;;  %s1172_s28 = sphi %s1241_s28, %s1610_s28   ;;  %s1168_s27 = sphi %s1239_s27, %s1600_s27   ;;  %s1164_s26 = sphi %s1237_s26, %s1599_s26   ;;  %s1160_s25 = sphi %s1235_s25, %s1609_s25   ;;  %s1156_s24 = sphi %s1233_s24, %s1608_s24   ;;  %s1152_s23 = sphi %s1231_s23, %s1597_s23   ;;  %s1148_s22 = sphi %s1229_s22, %s1607_s22   ;;  %s1144_s21 = sphi %s1227_s21, %s1606_s21   ;;  %s1140_s20 = sphi %s1225_s20, %s1605_s20   ;;  %s1136_s19 = sphi %s1223_s19, %s1604_s19   ;;  %s1132_s18 = sphi %s1221_s18, %s1603_s18  }
  0x15   : > { %1571 = sst [smem:[#allocation18_spill]] %s1164_s26  ;;  %p81_p1 = scmp.ne.s32.totalorder %s1152_s23, %s1148_s22 }
  0x16   : > { %1572 = sst [smem:[#allocation19_spill]] %s1168_s27  ;;  %p87_p2 = scmp.ne.s32.totalorder %s1148_s22, %s1144_s21 }
  0x17   : > { %1573 = sst [smem:[#allocation20_spill]] %s1176_s29  ;;  %p780_p3 = scmp.lt.s32.totalorder %s1184_s6, 4 }
  0x18   : > { %p83_p4 = por %p81_p1, %p54_p0  ;;  %s234_s8 = sand.u32 1, %s1184_s6  }
  0x19   : > { %s236_s9 = sand.u32 1, %s1152_s23   ;;  %s744_s11 = sshll.u32 %s1176_s29, 5 }
  0x1a   : > { %s698_s10 = sshll.u32 %s236_s9, 6  ;;  %s243_s12 = sadd.s32 %s1180_s30, %s744_s11 }
  0x1b   : > { %s701_s13 = sshll.u32 %s243_s12, 2  ;;  %s238_s14 = scalar_lea.vmem [#allocation6], %s698_s10 }
  0x1c   : > { %s248_s15 = sshll.u32 %s238_s14, 4  ;;  %s1574_s1 = sld [smem:[#allocation26_spill]]  ;;  %s249_s15 = int_to_ptr.vmem [resolvable:$true] %s248_s15 }
  0x1d   : > { %p767_p5 = pnand %p780_p3, %p83_p4  ;;  %p702_p6 = scmp.ge.s32.totalorder %s1184_s6, 1 }
  0x1e   : > { %s1310_s9 = scalar_lea.sflag [#allocation7], %s234_s8  ;;  %s1186_s10 = smov 128  }
  0x1f   : > { %s1187_s11 = smov 64   ;;  %s1188_s12 = smov 4  }
  0x20   : > { %p296_p7 = scmp.lt.s32.totalorder %s1184_s6, 5  ;;  %s36_s8 = sadd.s32 1, %s1176_s29 }
  0x21   : > { %p37_p9 = scmp.ge.s32.totalorder %s36_s8, 2  ;;  %s39_s14 = sadd.s32 1, %s1180_s30 }
  0x22   : > { %s245_s7 = scalar_lea.hbm %s1574_s1, %s701_s13  ;;  %p1314_p8 = pnand %p702_p6, %p296_p7 }
  0x23   : > { %s246_s5 = sshll.u32 %s245_s7, 4  ;;  %s1319_s13 = sadd.s32 4294967295, %s1184_s6   ;;  %s247_s5 = int_to_ptr.hbm [resolvable:$true] %s246_s5 }
  0x24   : > { %769 = dma.hbm_to_vmem [thread:$0]  (!%p767_p5), %s247_s5, 1024, %s249_s15, %s1310_s9, %s1186_s10, %s1187_s11, %s1188_s12  }
  0x25   : > { %s46_s16 = sadd.s32 1, %s1164_s26  ;;  %p53_p10 = scmp.ne.s32.totalorder %s1164_s26, %s1160_s25 }
  0x26   : > { %s1614_s8 = smov (%p37_p9, %s36_s8), 0  ;;  %s1616_s14 = smov (!%p37_p9, %s39_s14), %s1180_s30 }
  0x27   : > { %1576 = sst [smem:[#allocation21_spill]] %s1614_s8  ;;  %s43_s5 = ssub.s32 %s1176_s29, %s1614_s8 }
  0x28   : > { %p1333_p11 = por %p54_p0, %p53_p10  ;;  %p41_p12 = scmp.ge.s32.totalorder %s1616_s14, 2 }
  0x29   : > { %p44_p13 = scmp.eq.s32.totalorder %s43_s5, 0  ;;  %p59_p1 = scmp.ne.s32.totalorder %s1160_s25, %s1156_s24 }
  0x2a   : > { %p60_p4 = scmp.eq.s32.totalorder %s1319_s13, 0  ;;  %s1618_s14 = smov (%p41_p12, %s1616_s14), 0 }
  0x2b   : > { %1578 = sst [smem:[#allocation22_spill]] %s1618_s14  ;;  %s70_s11 = ssub.s32 %s1180_s30, %s1618_s14 }
  0x2c   : > { %s1343_s17 = scalar_select %p44_p13, %s1164_s26, %s46_s16  }
  0x2d   : > { %p1347_p5 = por %p60_p4, %p59_p1  ;;  %s71_s12 = sor.u32 %s70_s11, %s43_s5 }
  0x2e   : > { %1579 = sst [smem:[#allocation23_spill]] %s1343_s17  ;;  %p1358_p6 = por %p87_p2, %p60_p4 }
  0x2f   : > { %p72_p7 = scmp.eq.s32.totalorder %s71_s12, 0  ;;  %s215_s16 = sand.u32 1, %s1164_s26  }
  0x30   : > { %s696_s1 = sshll.u32 %s215_s16, 3  ;;  %s1582_s8 = sadd.s32 1, %s1152_s23 }
  0x31   : > { %s1366_s17 = scalar_select %p72_p7, %s1152_s23, %s1582_s8  }
  0x32   : > { %s697_s5 = sshll.u32 %s1176_s29, 3  ;;  %s1584_s0 = sld [smem:[#allocation25_spill]] }
  0x33   : > { %1583 = sst [smem:[#allocation24_spill]] %s1366_s17  ;;  %s219_s3 = scalar_lea.vmem [#allocation3], %s696_s1 }
  0x34   : > { %s227_s12 = sshll.u32 %s219_s3, 4  ;;  %p764_p2 = pnand %p780_p3, %p1333_p11  ;;  %s228_s12 = int_to_ptr.vmem [resolvable:$true] %s227_s12 }
  0x35   : > { %s216_s8 = scalar_lea.sflag [#allocation4], %s215_s16  ;;  %s693_s29 = sadd.s32 4294967294, %s1184_s6  }
  0x36   : > { %p98_p9 = scmp.eq.s32.totalorder %s70_s11, 0  ;;  %s100_s17 = sadd.s32 1, %s1140_s20 }
  0x37   : > { %p107_p10 = scmp.ne.s32.totalorder %s1140_s20, %s1136_s19  ;;  %p113_p12 = scmp.ne.s32.totalorder %s1136_s19, %s1132_s18 }
  0x38   : > { %s223_s27 = scalar_lea.hbm %s1584_s0, %s697_s5  ;;  %p189_p1 = scmp.eq.s32.totalorder %s1319_s13, 3 }
  0x39   : > { %s225_s26 = sshll.u32 %s223_s27, 4  ;;  %p1387_p13 = por %p107_p10, %p54_p0  ;;  %s226_s26 = int_to_ptr.hbm [resolvable:$true] %s225_s26 }
  0x3a   : > { %766 = dma.hbm_to_vmem [thread:$0]  (!%p764_p2), %s226_s26, 128, %s228_s12, %s216_s8  }
  0x3b   : > { %s1383_s1 = scalar_select %p98_p9, %s1140_s20, %s100_s17  }
  0x3c   : > { %p1393_p11 = por %p113_p12, %p60_p4  ;;  %p195_p7 = scmp.eq.s32.totalorder %s693_s29, 3 }
  0x3d   : > { %s260_s26 = sand.u32 1, %s1140_s20   ;;  %s1587_s2 = sld [smem:[#allocation27_spill]] }
  0x3e   : > { %p1403_p2 = por %p189_p1, %p107_p10  ;;  %p1407_p0 = por %p195_p7, %p113_p12 }
  0x3f   : > { %s261_s21 = scalar_lea.vmem [#allocation8], %s260_s26  ;;  %p770_p4 = pnand %p780_p3, %p1387_p13 }
  0x40   : > { %s268_s12 = sshll.u32 %s261_s21, 4  ;;  %s287_s14 = scalar_lea.hbm %s1557_s4, %s1180_s30  ;;  %s269_s12 = int_to_ptr.vmem [resolvable:$true] %s268_s12 }
  0x41   : > { %s289_s15 = sshll.u32 %s287_s14, 4  ;;  %s284_s0 = scalar_lea.vmem [#allocation9], %s260_s26  ;;  %s290_s15 = int_to_ptr.hbm [resolvable:$true] %s289_s15 }
  0x42   : > { %s282_s23 = scalar_lea.sflag [#allocation10], %s260_s26  ;;  %300 = sbr.rel (%p1314_p8) target bundleno = 353 (0x161), region = 40 }
  0x43   : > { %s264_s17 = scalar_lea.hbm %s1587_s2, %s1180_s30  ;;  %s291_s2 = sshll.u32 %s284_s0, 4  ;;  %s292_s2 = int_to_ptr.vmem [resolvable:$true] %s291_s2 }
  0x44   : > { %s266_s5 = sshll.u32 %s264_s17, 4  ;;  %s302_s3 = sand.u32 (!%p1314_p8), 1, %s1160_s25   ;;  %s267_s5 = int_to_ptr.hbm [resolvable:$true] %s266_s5 }
  0x45   : > { %772 = dma.hbm_to_vmem [thread:$0]  (!%p770_p4), %s267_s5, 16, %s269_s12, %s1310_s9  }
  0x46   : > { %775 = dma.hbm_to_vmem [thread:$0]  (!%p770_p4), %s290_s15, 16, %s292_s2, %s282_s23  }
  0x47   : > { %s1423_s17 = sshll.u32 %s302_s3, 3  ;;  %s303_s21 = scalar_lea.sflag [#allocation4], %s302_s3 }
  0x48   : > { %s306_s29 = scalar_lea.vmem [#allocation3], %s1423_s17 }
  0x49   : > { %1111 = dma.done.wait (%p1347_p5), %s303_s21, 128  }
  0x4a   : > { %1113 = vsyncadd (%p1347_p5), %s303_s21, 4294967168  ;;  %s312_s0 = sand.u32 1, %s1319_s13   ;;  %s314_s2 = sand.u32 1, %s1148_s22  }
  0x4b   : > { %s704_s23 = sshll.u32 %s314_s2, 6  ;;  %s313_s9 = scalar_lea.sflag [#allocation7], %s312_s0 }
  0x4c   : > { %s1432_s7 = scalar_lea.vmem [#allocation6], %s704_s23 }
  0x4d   : > { %1115 = dma.done.wait (%p1358_p6), %s313_s9, 1024  }
  0x4e   : > { %1117 = vsyncadd (%p1358_p6), %s313_s9, 4294966272  ;;  %s1439_s26 = sand.u32 1, %s1136_s19  }
  0x4f   : > { %s325_s10 = scalar_lea.vmem [#allocation8], %s1439_s26 }
  0x50   : > { %1119 = dma.done.wait (%p1393_p11), %s313_s9, 16  }
  0x51   : > { %1121 = vsyncadd (%p1393_p11), %s313_s9, 4294967280  ;;  %s332_s13 = scalar_lea.sflag [#allocation10], %s1439_s26  ;;  %s334_s5 = scalar_lea.vmem [#allocation9], %s1439_s26 }
  0x52   : > { %1123 = dma.done.wait (%p1393_p11), %s332_s13, 16  }
  0x53   : > { %1125 = vsyncadd (%p1393_p11), %s332_s13, 4294967280  ;;  %s705_s24 = sshll.u32 %s1439_s26, 3  ;;  %p379_p3 = scmp.lt.s32.totalorder %s1172_s28, 1 }
  0x54   : > { %s1590_s15 = sld [smem:[#allocation28_spill]]  ;;  %s1461_s21 = scalar_lea.vmem [#allocation11], %s705_s24 }
  0x55   : > { %s1455_s12 = scalar_select %p379_p3, %s1172_s28, 1 }
  0x56   : > { %s1591_s0 = sld [smem:[#allocation19_spill]] }
  0x5a   : > { %s381_s3 = scalar_lea.vmem %s1590_s15, %s1455_s12 }
  0x5c   : > { %p706_p8 = scmp.ne.s32.totalorder %s1591_s0, 0 }
  0x5e   : > { %385 = sbr.rel (%p706_p8) target bundleno = 101 (0x65), region = 60 }
  0x63   : > { %v1189_v0 = vmov 0.0  }
  0x64   : > { %386 = vst [vmem:[#allocation2] sm:$0xff] %v1189_v0 }
  0x65 PF: > { %v752_v1 = vld [vmem:[%s1432_s7 + $0x38] sm:$0xff]  ;;  %v751_v2 = vld [vmem:[%s1432_s7 + $0x30] sm:$0xff]  ;;  %v750_v3 = vld [vmem:[%s1432_s7 + $0x28] sm:$0xff]  ;;  %s1592_s27 = sld [smem:[#allocation19_spill]] }
  0x66   : > { %454 = vmatpush.bf16.msra.mxu0 %v752_v1  ;;  %v749_v4 = vld [vmem:[%s1432_s7 + $0x20] sm:$0xff]  ;;  %v748_v5 = vld [vmem:[%s1432_s7 + $0x18] sm:$0xff]  ;;  %v747_v6 = vld [vmem:[%s1432_s7 + $0x10] sm:$0xff] }
  0x67   : > { %v746_v7 = vld [vmem:[%s1432_s7 + $0x8] sm:$0xff]  ;;  %v745_v8 = vld [vmem:[%s1432_s7] sm:$0xff]  ;;  %v388_v9 = vld [vmem:[%s306_s29] sm:$0xff] }
  0x68   : > { %v389_v10 = vpack.c.bf16 %v388_v9, %v388_v9 }
  0x6a   : > { %455 = vmatpush.bf16.msra.mxu0 %v751_v2 }
  0x6b   : > { %v387_v11 = vld [vmem:[#allocation2] sm:$0xff]  ;;  %p739_p5 = scmp.ne.s32.totalorder %s1592_s27, 1 }
  0x6e   : > { %456 = vmatpush.bf16.msra.mxu0 %v750_v3 }
  0x72   : > { %457 = vmatpush.bf16.msra.mxu0 %v749_v4 }
  0x76   : > { %458 = vmatpush.bf16.msra.mxu0 %v748_v5 }
  0x7a   : > { %459 = vmatpush.bf16.msra.mxu0 %v747_v6 }
  0x7e   : > { %460 = vmatpush.bf16.msra.mxu0 %v746_v7 }
  0x82   : > { %461 = vmatpush.bf16.msra.mxu0 %v745_v8 }
  0x85   : > { %462 = vmatmul.bf16.vlgmr.msra.gmra.mxu0 %v389_v10 }
 0x102   : > { %v463_v12 = vpop.f32.mrf.mxu0 }
 0x103   : > { %v467_v13 = vadd.f32 %v463_v12, %v387_v11 }
 0x105   : > { %468 = vst [vmem:[#allocation2] sm:$0xff] %v467_v13 }
 0x106   : > { %472 = sbr.rel (%p739_p5) target bundleno = 333 (0x14d), region = 64 }
 0x10a   : > { %v465_v14 = vpop.f32.mrf.mxu0 }
 0x10b   : > { %v899_v16 = vld [vmem:[%s325_s10] ss:$0 sm:$0xff]  ;;  %v1190_v17 = vmov 8.0  }
 0x10c   : > { %v473_v15 = vld [vmem:[#allocation2] sm:$0xff]  ;;  %902 = vrcp.f32 %v1190_v17 }
 0x10d   : > { %v478_v18 = vadd.f32 %v899_v16, %v473_v15  ;;  %v900_v48 = vld [vmem:[%s381_s3] ss:$0 sm:$0xff] }
 0x10e   : > { %v901_v51 = vld [vmem:[%s334_s5] ss:$0 sm:$0xff] }
 0x10f   : > { %v479_v19 = vrot.slane %v478_v18, 4 }
 0x111   : > { %v480_v20 = vadd.f32 %v479_v19, %v478_v18 }
 0x112   : > { %v903_v21 = vpop.eup %902 }
 0x113   : > { %v481_v22 = vrot.slane %v480_v20, 2  ;;  %v486_v23 = vmul.f32 8.0, %v903_v21  ;;  %vm490_vm0 = vweird.f32 %v903_v21 }
 0x115   : > { %v482_v24 = vadd.f32 %v481_v22, %v480_v20  ;;  %v487_v25 = vsub.f32 1.0, %v486_v23 }
 0x117   : > { %v483_v26 = vrot.slane %v482_v24, 1  ;;  %v488_v27 = vmul.f32 %v903_v21, %v487_v25 }
 0x119   : > { %v484_v28 = vadd.f32 %v483_v26, %v482_v24  ;;  %v489_v29 = vadd.f32 %v903_v21, %v488_v27 }
 0x11b   : > { %v491_v30 = vsel %vm490_vm0, %v903_v21, %v489_v29 }
 0x11c   : > { %v492_v31 = vmul.f32 %v491_v30, %v484_v28 }
 0x11e   : > { %v493_v32 = vsub.f32 %v478_v18, %v492_v31 }
 0x120   : > { %v494_v33 = vmul.f32 %v493_v32, %v493_v32 }
 0x122   : > { %v495_v34 = vrot.slane %v494_v33, 4 }
 0x124   : > { %v496_v35 = vadd.f32 %v495_v34, %v494_v33 }
 0x126   : > { %v497_v36 = vrot.slane %v496_v35, 2 }
 0x128   : > { %v498_v37 = vadd.f32 %v497_v36, %v496_v35 }
 0x12a   : > { %v499_v38 = vrot.slane %v498_v37, 1 }
 0x12c   : > { %v500_v39 = vadd.f32 %v499_v38, %v498_v37 }
 0x12e   : > { %v501_v40 = vmul.f32 %v500_v39, %v491_v30 }
 0x130   : > { %v502_v41 = vadd.f32 1e-05, %v501_v40 }
 0x132   : > { %904 = vrsqrt.f32 %v502_v41  ;;  %vm509_vm1 = vweird.f32 %v502_v41 }
 0x138   : > { %v905_v42 = vpop.eup %904 }
 0x139   : > { %v504_v43 = vmul.f32 %v905_v42, %v502_v41  ;;  %vm510_vm2 = vweird.f32 %v905_v42 }
 0x13a   : > { %vm511_vm3 = vmor %vm509_vm1, %vm510_vm2 }
 0x13b   : > { %v505_v44 = vmul.f32 %v905_v42, %v504_v43 }
 0x13d   : > { %v506_v45 = vmul.f32 0.5, %v505_v44 }
 0x13f   : > { %v507_v46 = vsub.f32 1.5, %v506_v45 }
 0x141   : > { %v508_v47 = vmul.f32 %v905_v42, %v507_v46 }
 0x143   : > { %v512_v49 = vsel %vm511_vm3, %v905_v42, %v508_v47 }
 0x144   : > { %v513_v50 = vmul.f32 %v512_v49, %v493_v32 }
 0x146   : > { %v518_v52 = vmul.f32 %v900_v48, %v513_v50 }
 0x148   : > { %v523_v53 = vadd.f32 %v901_v51, %v518_v52 }
 0x14a   : > { %v524_v54 = vmax.f32 %v523_v53, 0.0 }
 0x14c   : > { %525 = vst [vmem:[%s1461_s21] sm:$0xff] %v524_v54 }
 0x14d PF: > { %s741_s23 = sshll.u32 %s1172_s28, 3  ;;  %s1594_s10 = sld [smem:[#allocation29_spill]] }
 0x14e   : > { %s539_s24 = sshll.u32 %s1461_s21, 4  ;;  %s527_s8 = scalar_lea.sflag [#allocation5], %s1439_s26  ;;  %s540_s24 = int_to_ptr.vmem [resolvable:$true] %s539_s24 }
 0x153   : > { %s537_s13 = scalar_lea.hbm %s1594_s10, %s741_s23  ;;  %s1046_s28 = scalar_lea.hbm %s1594_s10, 16 }
 0x154   : > { %s541_s12 = sshll.u32 %s537_s13, 4  ;;  %s542_s12 = int_to_ptr.hbm [resolvable:$true] %s541_s12 }
 0x155   : > { %s1040_s5 = sshra.s32 %s542_s12, 4  ;;  %s1041_s5 = int_to_ptr.hbm [resolvable:$true] %s1040_s5 }
 0x156   : > { %s1042_s14 = scalar_lea.hbm %s1041_s5, 8  ;;  %p1047_p12 = scmp.lt.s32.totalorder %s1041_s5, %s1594_s10 }
 0x157   : > { %p1043_p6 = scmp.ne.s32.totalorder %s1041_s5, %s1042_s14  ;;  %p1048_p13 = scmp.lt.s32.totalorder %s1046_s28, %s1042_s14 }
 0x159   : > { %p1044_p9 = pnand %p1043_p6, %p1403_p2  ;;  %p1049_p11 = por %p1048_p13, %p1047_p12 }
 0x15b   : > { %p1045_p10 = pneg %p1044_p9 }
 0x15d   : > { %p1050_p1 = pnand %p1049_p11, %p1045_p10 }
 0x15f   : > { %1053 = shalt.err (!%p1050_p1)
}
 0x160   : > { %761 = dma.vmem_to_hbm [thread:$0]  (%p1403_p2), %s540_s24, 128, %s542_s12, %s527_s8  }
 0x161 PF: > { %p781_p7 = scmp.ge.s32.totalorder %s1184_s6, 2  ;;  %s553_s26 = sand.u32 1, %s1132_s18  }
 0x162   : > { %s554_s21 = scalar_lea.sflag [#allocation5], %s553_s26 }
 0x163   : > { %p777_p4 = pnand %p781_p7, %p1407_p0 }
 0x165   : > { %p778_p3 = pneg %p777_p4 }
 0x167   : > { %1127 = dma.done.wait (%p778_p3), %s554_s21, 128  }
 0x168   : > { %1129 = vsyncadd (%p778_p3), %s554_s21, 4294967168  ;;  %s27_s6 = sadd.s32 1, %s1184_s6   ;;  %s1596_s11 = sld [smem:[#allocation17_spill]] }
 0x169   : > { %p1506_p8 = scmp.ge.s32.totalorder %s27_s6, 6   ;;  %s1597_s23 = sld [smem:[#allocation24_spill]] }
 0x16a   : > { %s1598_s29 = sld [smem:[#allocation18_spill]]  ;;  %s1603_s18 = smov %s1136_s19 }
 0x16b   : > { %s1599_s26 = sld [smem:[#allocation23_spill]]  ;;  %s1604_s19 = smov %s1140_s20 }
 0x16c   : > { %s1600_s27 = sld [smem:[#allocation20_spill]]  ;;  %s1605_s20 = smov %s1383_s1 }
 0x16d   : > { %s1601_s16 = sld [smem:[#allocation21_spill]]  ;;  %s1606_s21 = smov %s1148_s22 }
 0x16e   : > { %s1602_s2 = sld [smem:[#allocation22_spill]]  ;;  %s1607_s22 = smov %s1596_s11 }
 0x16f   : > { %s1608_s24 = smov %s1160_s25  ;;  %s1610_s28 = smov %s1180_s30 }
 0x170   : > { %s1609_s25 = smov %s1598_s29  ;;  %26 = sbr.rel (!%p1506_p8) target bundleno = 20 (0x14), region = 133 }
 0x173   : > { %s1611_s29 = smov %s1601_s16 }
 0x174   : > { %s1612_s30 = smov %s1602_s2 }
 0x175   :  { %560 = vsyncpa [#allocation4], 1 }
 0x176   :  { %562 = vsyncpa [#allocation4 + $0x1], 1 }
 0x177   :  { %563 = vsyncpa [#allocation7], 1 }
 0x178   :  { %565 = vsyncpa [#allocation7 + $0x1], 1 }
 0x179   :  { %566 = vsyncpa [#allocation10], 1 }
 0x17a   :  { %568 = vsyncpa [#allocation10 + $0x1], 1 }
 0x17b   :  { %569 = vsyncpa [#allocation5], 1 }
 0x17c   :  { %571 = vsyncpa [#allocation5 + $0x1], 1 }

</bundles_post_ra>
